<compile_context>
chip_gen: v7x
topology: tpu7x:2x2x1
jax: 0.10.0
libtpu: 0.0.40
codegen_flags: <defaults>
</compile_context>

<pallas_src>
import functools
import math

import jax
import jax.numpy as jnp
from jax.experimental import pallas as pl
from jax.experimental.pallas import tpu as pltpu


def _round_up(x, m):
    return (x + m - 1) // m * m


def _cdiv(a, b):
    return (a + b - 1) // b


def _vmem_cap_bytes():
    """~85% of this generation's physical VMEM (conservative fallback)."""
    try:
        cap = int(pltpu.get_tpu_info().vmem_capacity_bytes)
        return max(int(cap * 0.85), 32 << 20)
    except Exception:
        return 56 << 20          # safe on v5e/v6e (128 MiB) and v7x (64 MiB)


def aspp_module_pallas(x_nchw, weight_oihw, bn_gamma, bn_beta, bn_mean, bn_var,
                       *, padding, dilation, eps=1e-5,
                       compute_dtype=jnp.bfloat16, out_dtype=None,
                       tile_h=None, tile_cout=None, tile_cin=None):
    """relu(bn(atrous_conv(x))) -- forward of _ASPPModule.

    x_nchw:      (N, Cin, H, W)
    weight_oihw: (Cout, Cin, KH, KW)   (bias=False)
    returns:     (N, Cout, Hout, Wout) in `out_dtype` (default: x.dtype)

    compute_dtype feeds the MXU (accumulation is always f32).  bfloat16 is the
    default on every generation (v5e/v6e/v7x MXUs are bf16 native); pass
    jnp.float32 for bit-accurate testing.
    """
    N, Cin, H, W = x_nchw.shape
    Cout, Cin_w, KH, KW = weight_oihw.shape
    assert Cin_w == Cin
    Hout = H + 2 * padding - dilation * (KH - 1)      # stride 1 (ASPP)
    Wout = W + 2 * padding - dilation * (KW - 1)
    assert Hout > 0 and Wout > 0

    cdt = jnp.dtype(compute_dtype)
    odt = jnp.dtype(out_dtype) if out_dtype is not None else jnp.dtype(x_nchw.dtype)
    itb = cdt.itemsize

    LANE, SUB = 128, 8
    Cout_p = _round_up(Cout, LANE)                    # lane-dense output channels
    Wout_p = _round_up(Wout, SUB)                     # sublane-aligned output width

    vmem_cap = _vmem_cap_bytes()

    # ---------------- tile selection -----------------------------------------
    if tile_cout is None:
        tile_cout = 256 if Cout_p % 256 == 0 else 128
    assert Cout_p % tile_cout == 0 and tile_cout % LANE == 0
    n_co = Cout_p // tile_cout

    if tile_cin is None:
        if Cin > 512 and Cin % 128 == 0:              # big-channel ASPP: tile the reduction
            tile_cin = 512 if Cin % 512 == 0 else (256 if Cin % 256 == 0 else 128)
        else:
            tile_cin = Cin
    assert Cin % tile_cin == 0
    assert tile_cin == Cin or tile_cin % LANE == 0
    n_cin = Cin // tile_cin

    if tile_h is None:                                # target matmul M of ~2K rows
        tile_h = max(1, min(Hout, 2048 // max(Wout_p, 1)))
        if N * n_co == 1 and Hout >= 2 and tile_h >= Hout:
            tile_h = _cdiv(Hout, 2)                   # >=2 parallel tiles (v7x megacore)
    tile_h = min(tile_h, Hout)
    n_h = _cdiv(Hout, tile_h)
    Hout_p = n_h * tile_h                             # padded output rows (cropped later)
    tile_h_in = tile_h + dilation * (KH - 1)          # halo-extended input rows per tile
    m_rows = tile_h * Wout_p                          # matmul M per output tile

    # Keep weights VMEM-resident (full Cin, index constant over n/h/ci) if they fit.
    w_resident = (2 * KH * KW * Cin * tile_cout * itb) <= vmem_cap // 2

    # ---------------- layout glue (plain JAX) ---------------------------------
    Hp = Hout_p + dilation * (KH - 1)                 # padded input rows needed
    Wp = Wout_p + dilation * (KW - 1)                 # padded input cols needed
    x_nhwc = jnp.transpose(x_nchw, (0, 2, 3, 1)).astype(cdt)   # N,H,W,Cin
    xpad = jnp.pad(x_nhwc, ((0, 0),
                            (padding, Hp - H - padding),
                            (padding, Wp - W - padding),
                            (0, 0)))

    # Overlapping halo windows: (N*n_h, tile_h_in, Wp, Cin); each grid step
    # then DMAs exactly the rows it needs.
    x_tiles = jnp.stack(
        [jax.lax.slice_in_dim(xpad, h * tile_h, h * tile_h + tile_h_in, axis=1)
         for h in range(n_h)], axis=1)
    x_tiles = x_tiles.reshape(N * n_h, tile_h_in, Wp, Cin)

    # (Cout,Cin,KH,KW) -> (KH*KW, Cin, Cout_p), zero-padded along Cout.
    w = jnp.transpose(weight_oihw, (2, 3, 1, 0)).reshape(KH * KW, Cin, Cout)
    w = jnp.pad(w, ((0, 0), (0, 0), (0, Cout_p - Cout))).astype(cdt)

    # BatchNorm (inference) folded into per-channel scale/shift (f32).
    inv_std = 1.0 / jnp.sqrt(bn_var.astype(jnp.float32) + eps)
    scale = bn_gamma.astype(jnp.float32) * inv_std
    shift = bn_beta.astype(jnp.float32) - bn_mean.astype(jnp.float32) * scale
    scale = jnp.pad(scale, (0, Cout_p - Cout)).reshape(1, Cout_p)
    shift = jnp.pad(shift, (0, Cout_p - Cout)).reshape(1, Cout_p)

    # ---------------- kernel ---------------------------------------------------
    def kernel(x_ref, w_ref, scale_ref, shift_ref, o_ref, *scratch):
        ci = pl.program_id(3)

        # KH*KW shifted matmuls on the MXU, chained into a single value so the
        # VMEM accumulator is read-modify-written once per grid step.
        part = None
        for kw in range(KW):
            # one sublane (W) shift per kw column; the H shift is then a
            # sublane-aligned row slice of the flattened (h*w, cin) view.
            xw = x_ref[0, :, kw * dilation: kw * dilation + Wout_p, :]
            xw2 = xw.reshape(tile_h_in * Wout_p, tile_cin)
            for kh in range(KH):
                tap = kh * KW + kw
                if w_resident and n_cin > 1:
                    c0 = pl.multiple_of(ci * tile_cin, tile_cin)
                    wk = w_ref[tap, pl.ds(c0, tile_cin), :]
                else:
                    wk = w_ref[tap]
                r0 = kh * dilation * Wout_p           # multiple of 8 (Wout_p % 8 == 0)
                d = jnp.dot(xw2[r0: r0 + m_rows, :], wk,
                            preferred_element_type=jnp.float32)
                part = d if part is None else part + d

        def _bn_relu_store(v):                        # fused BN + ReLU epilogue (f32)
            y = v * scale_ref[0] + shift_ref[0]
            y = jnp.maximum(y, 0.0)
            o_ref[0] = y.reshape(tile_h, Wout_p, tile_cout).astype(o_ref.dtype)

        if n_cin == 1:
            _bn_relu_store(part)
        else:
            acc_ref = scratch[0]

            @pl.when(ci == 0)
            def _():
                acc_ref[...] = part

            @pl.when(ci != 0)
            def _():
                acc_ref[...] += part

            @pl.when(ci == n_cin - 1)
            def _():
                _bn_relu_store(acc_ref[...])

    grid = (N, n_h, n_co, n_cin)

    if w_resident:
        # constant over (n, h, ci): fetched once per co tile (once total if n_co==1).
        w_spec = pl.BlockSpec((KH * KW, Cin, tile_cout),
                              lambda n, h, co, ci: (0, 0, co))
    else:
        w_spec = pl.BlockSpec((KH * KW, tile_cin, tile_cout),
                              lambda n, h, co, ci: (0, ci, co))

    in_specs = [
        # halo tile: only the tile_h_in rows this step needs.
        pl.BlockSpec((1, tile_h_in, Wp, tile_cin),
                     lambda n, h, co, ci: (n * n_h + h, 0, 0, ci)),
        w_spec,
        pl.BlockSpec((1, tile_cout), lambda n, h, co, ci: (0, co)),
        pl.BlockSpec((1, tile_cout), lambda n, h, co, ci: (0, co)),
    ]
    out_spec = pl.BlockSpec((1, tile_h, Wout_p, tile_cout),
                            lambda n, h, co, ci: (n, h, 0, co))

    scratch_shapes = ([pltpu.VMEM((m_rows, tile_cout), jnp.float32)]
                      if n_cin > 1 else [])

    # VMEM budget from the actual buffers (double-buffered blocks + scratch + live values).
    w_cin = Cin if w_resident else tile_cin
    est = (2 * tile_h_in * Wp * tile_cin * itb             # input blocks
           + 2 * KH * KW * w_cin * tile_cout * itb         # weight blocks
           + 2 * m_rows * tile_cout * odt.itemsize         # output blocks
           + m_rows * tile_cout * 4 * (2 if n_cin > 1 else 1)  # acc scratch + `part`
           + tile_h_in * Wout_p * tile_cin * itb           # shifted-window temp
           + 4 * tile_cout * 4)                            # scale / shift
    vmem_limit = min(max(int(est * 1.4) + (4 << 20), 32 << 20), vmem_cap)

    out_nhwc = pl.pallas_call(
        kernel,
        out_shape=jax.ShapeDtypeStruct((N, Hout_p, Wout_p, Cout_p), odt),
        grid_spec=pltpu.PrefetchScalarGridSpec(
            num_scalar_prefetch=0,
            grid=grid,
            in_specs=in_specs,
            out_specs=out_spec,
            scratch_shapes=scratch_shapes),
        compiler_params=pltpu.CompilerParams(
            dimension_semantics=("parallel", "parallel", "parallel", "arbitrary"),
            vmem_limit_bytes=vmem_limit),
    )(x_tiles, w, scale, shift)

    out_nhwc = out_nhwc[:, :Hout, :Wout, :Cout]             # crop H/W/Cout padding
    return jnp.transpose(out_nhwc, (0, 3, 1, 2))            # back to NCHW


def _reference(x_nchw, weight_oihw, gamma, beta, mean, var,
               *, padding, dilation, eps=1e-5):
    y = jax.lax.conv_general_dilated(
        x_nchw, weight_oihw,
        window_strides=(1, 1),
        padding=((padding, padding), (padding, padding)),
        rhs_dilation=(dilation, dilation),
        dimension_numbers=("NCHW", "OIHW", "NCHW"))
    inv_std = 1.0 / jnp.sqrt(var + eps)
    y = y * (gamma * inv_std)[None, :, None, None] + \
        (beta - mean * gamma * inv_std)[None, :, None, None]
    return jnp.maximum(y, 0.0)


if __name__ == "__main__":
    # Small shapes consistent with an ASPP 3x3 dilated branch.
    N, Cin, H, W = 2, 4, 16, 16
    Cout, KH, KW = 8, 3, 3
    dilation = 2
    padding = 2  # ASPP uses padding == dilation for 3x3 branches

    key = jax.random.PRNGKey(0)
    kx, kw_key = jax.random.split(key)
    x = jax.random.normal(kx, (N, Cin, H, W), dtype=jnp.float32)

    # kaiming_normal_ (fan_in mode, relu gain): std = sqrt(2 / (Cin*KH*KW))
    fan_in = Cin * KH * KW
    weight = jax.random.normal(kw_key, (Cout, Cin, KH, KW), jnp.float32) * math.sqrt(2.0 / fan_in)

    # BatchNorm params per _init_weight: weight=1, bias=0; default running stats.
    gamma = jnp.ones((Cout,), jnp.float32)
    beta = jnp.zeros((Cout,), jnp.float32)
    running_mean = jnp.zeros((Cout,), jnp.float32)
    running_var = jnp.ones((Cout,), jnp.float32)

    ref = _reference(x, weight, gamma, beta, running_mean, running_var,
                     padding=padding, dilation=dilation)

    # f32 compute path (tight tolerance); tile_h=8 forces multiple H tiles and
    # exercises the halo-window tiling.
    fwd_f32 = jax.jit(functools.partial(
        aspp_module_pallas, padding=padding, dilation=dilation,
        compute_dtype=jnp.float32, tile_h=8))
    out = jax.block_until_ready(fwd_f32(x, weight, gamma, beta,
                                        running_mean, running_var))
    assert out.shape == (N, Cout, H, W), out.shape
    assert jnp.allclose(out, ref, rtol=1e-4, atol=1e-4)

    # Default bf16 MXU path (f32 accumulation) -- looser tolerance.
    fwd_bf16 = jax.jit(functools.partial(
        aspp_module_pallas, padding=padding, dilation=dilation, tile_h=8))
    out_bf16 = jax.block_until_ready(fwd_bf16(x, weight, gamma, beta,
                                              running_mean, running_var))
    assert out_bf16.shape == (N, Cout, H, W), out_bf16.shape
    assert jnp.allclose(out_bf16.astype(jnp.float32), ref, rtol=5e-2, atol=5e-2)

    print("KERNEL_OK")
</pallas_src>

<mosaic_0001>
module attributes {stable_mosaic.version = 11 : i64} {
  func.func @kernel(%arg0: i32, %arg1: i32, %arg2: i32, %arg3: i32, %arg4: memref<1x12x20x4xf32, #tpu.memory_space<vmem>>, %arg5: memref<9x4x128xf32, #tpu.memory_space<vmem>>, %arg6: memref<1x128xf32, #tpu.memory_space<vmem>>, %arg7: memref<1x128xf32, #tpu.memory_space<vmem>>, %arg8: memref<1x8x16x128xf32, #tpu.memory_space<vmem>>) attributes {dimension_semantics = [#tpu.dimension_semantics<parallel>, #tpu.dimension_semantics<parallel>, #tpu.dimension_semantics<parallel>, #tpu.dimension_semantics<arbitrary>], iteration_bounds = array<i64: 2, 2, 1, 1>, scalar_prefetch = 0 : i64, scratch_operands = 0 : i64, tpu.core_type = #tpu.core_type<tc>, window_params = [{transform_indices = @transform_0, window_bounds = array<i64: 1, 12, 20, 4>}, {transform_indices = @transform_1, window_bounds = array<i64: 9, 4, 128>}, {transform_indices = @transform_2, window_bounds = array<i64: 1, 128>}, {transform_indices = @transform_3, window_bounds = array<i64: 1, 128>}, {transform_indices = @transform_4, window_bounds = array<i64: 1, 8, 16, 128>}]} {
    %c0 = arith.constant 0 : index
    %c0_0 = arith.constant 0 : index
    %c0_1 = arith.constant 0 : index
    %c0_2 = arith.constant 0 : index
    %0 = vector.load %arg4[%c0, %c0_0, %c0_1, %c0_2] : memref<1x12x20x4xf32, #tpu.memory_space<vmem>>, vector<1x12x16x4xf32>
    %1 = vector.shape_cast %0 : vector<1x12x16x4xf32> to vector<12x16x4xf32>
    %2 = vector.shape_cast %1 : vector<12x16x4xf32> to vector<192x4xf32>
    %c0_3 = arith.constant 0 : index
    %c0_4 = arith.constant 0 : index
    %c0_5 = arith.constant 0 : index
    %3 = vector.load %arg5[%c0_3, %c0_4, %c0_5] : memref<9x4x128xf32, #tpu.memory_space<vmem>>, vector<1x4x128xf32>
    %4 = vector.shape_cast %3 : vector<1x4x128xf32> to vector<4x128xf32>
    %5 = vector.extract_strided_slice %2 {offsets = [0, 0], sizes = [128, 4], strides = [1, 1]} : vector<192x4xf32> to vector<128x4xf32>
    %cst = arith.constant dense<0.000000e+00> : vector<128x128xf32>
    %6 = tpu.matmul %5, %4, %cst {dimension_numbers = #tpu.dot_dimension_numbers<[1], [0], [0], [1], [0, 0, 1, 1], [], []>} : vector<128x4xf32>, vector<4x128xf32>, vector<128x128xf32> -> vector<128x128xf32>
    %c3 = arith.constant 3 : index
    %c0_6 = arith.constant 0 : index
    %c0_7 = arith.constant 0 : index
    %7 = vector.load %arg5[%c3, %c0_6, %c0_7] : memref<9x4x128xf32, #tpu.memory_space<vmem>>, vector<1x4x128xf32>
    %8 = vector.shape_cast %7 : vector<1x4x128xf32> to vector<4x128xf32>
    %9 = vector.extract_strided_slice %2 {offsets = [32, 0], sizes = [128, 4], strides = [1, 1]} : vector<192x4xf32> to vector<128x4xf32>
    %cst_8 = arith.constant dense<0.000000e+00> : vector<128x128xf32>
    %10 = tpu.matmul %9, %8, %cst_8 {dimension_numbers = #tpu.dot_dimension_numbers<[1], [0], [0], [1], [0, 0, 1, 1], [], []>} : vector<128x4xf32>, vector<4x128xf32>, vector<128x128xf32> -> vector<128x128xf32>
    %11 = arith.addf %6, %10 : vector<128x128xf32>
    %c6 = arith.constant 6 : index
    %c0_9 = arith.constant 0 : index
    %c0_10 = arith.constant 0 : index
    %12 = vector.load %arg5[%c6, %c0_9, %c0_10] : memref<9x4x128xf32, #tpu.memory_space<vmem>>, vector<1x4x128xf32>
    %13 = vector.shape_cast %12 : vector<1x4x128xf32> to vector<4x128xf32>
    %14 = vector.extract_strided_slice %2 {offsets = [64, 0], sizes = [128, 4], strides = [1, 1]} : vector<192x4xf32> to vector<128x4xf32>
    %cst_11 = arith.constant dense<0.000000e+00> : vector<128x128xf32>
    %15 = tpu.matmul %14, %13, %cst_11 {dimension_numbers = #tpu.dot_dimension_numbers<[1], [0], [0], [1], [0, 0, 1, 1], [], []>} : vector<128x4xf32>, vector<4x128xf32>, vector<128x128xf32> -> vector<128x128xf32>
    %16 = arith.addf %11, %15 : vector<128x128xf32>
    %c0_12 = arith.constant 0 : index
    %c0_13 = arith.constant 0 : index
    %c2 = arith.constant 2 : index
    %c0_14 = arith.constant 0 : index
    %17 = vector.load %arg4[%c0_12, %c0_13, %c2, %c0_14] : memref<1x12x20x4xf32, #tpu.memory_space<vmem>>, vector<1x12x16x4xf32>
    %18 = vector.shape_cast %17 : vector<1x12x16x4xf32> to vector<12x16x4xf32>
    %19 = vector.shape_cast %18 : vector<12x16x4xf32> to vector<192x4xf32>
    %c1 = arith.constant 1 : index
    %c0_15 = arith.constant 0 : index
    %c0_16 = arith.constant 0 : index
    %20 = vector.load %arg5[%c1, %c0_15, %c0_16] : memref<9x4x128xf32, #tpu.memory_space<vmem>>, vector<1x4x128xf32>
    %21 = vector.shape_cast %20 : vector<1x4x128xf32> to vector<4x128xf32>
    %22 = vector.extract_strided_slice %19 {offsets = [0, 0], sizes = [128, 4], strides = [1, 1]} : vector<192x4xf32> to vector<128x4xf32>
    %cst_17 = arith.constant dense<0.000000e+00> : vector<128x128xf32>
    %23 = tpu.matmul %22, %21, %cst_17 {dimension_numbers = #tpu.dot_dimension_numbers<[1], [0], [0], [1], [0, 0, 1, 1], [], []>} : vector<128x4xf32>, vector<4x128xf32>, vector<128x128xf32> -> vector<128x128xf32>
    %24 = arith.addf %16, %23 : vector<128x128xf32>
    %c4 = arith.constant 4 : index
    %c0_18 = arith.constant 0 : index
    %c0_19 = arith.constant 0 : index
    %25 = vector.load %arg5[%c4, %c0_18, %c0_19] : memref<9x4x128xf32, #tpu.memory_space<vmem>>, vector<1x4x128xf32>
    %26 = vector.shape_cast %25 : vector<1x4x128xf32> to vector<4x128xf32>
    %27 = vector.extract_strided_slice %19 {offsets = [32, 0], sizes = [128, 4], strides = [1, 1]} : vector<192x4xf32> to vector<128x4xf32>
    %cst_20 = arith.constant dense<0.000000e+00> : vector<128x128xf32>
    %28 = tpu.matmul %27, %26, %cst_20 {dimension_numbers = #tpu.dot_dimension_numbers<[1], [0], [0], [1], [0, 0, 1, 1], [], []>} : vector<128x4xf32>, vector<4x128xf32>, vector<128x128xf32> -> vector<128x128xf32>
    %29 = arith.addf %24, %28 : vector<128x128xf32>
    %c7 = arith.constant 7 : index
    %c0_21 = arith.constant 0 : index
    %c0_22 = arith.constant 0 : index
    %30 = vector.load %arg5[%c7, %c0_21, %c0_22] : memref<9x4x128xf32, #tpu.memory_space<vmem>>, vector<1x4x128xf32>
    %31 = vector.shape_cast %30 : vector<1x4x128xf32> to vector<4x128xf32>
    %32 = vector.extract_strided_slice %19 {offsets = [64, 0], sizes = [128, 4], strides = [1, 1]} : vector<192x4xf32> to vector<128x4xf32>
    %cst_23 = arith.constant dense<0.000000e+00> : vector<128x128xf32>
    %33 = tpu.matmul %32, %31, %cst_23 {dimension_numbers = #tpu.dot_dimension_numbers<[1], [0], [0], [1], [0, 0, 1, 1], [], []>} : vector<128x4xf32>, vector<4x128xf32>, vector<128x128xf32> -> vector<128x128xf32>
    %34 = arith.addf %29, %33 : vector<128x128xf32>
    %c0_24 = arith.constant 0 : index
    %c0_25 = arith.constant 0 : index
    %c4_26 = arith.constant 4 : index
    %c0_27 = arith.constant 0 : index
    %35 = vector.load %arg4[%c0_24, %c0_25, %c4_26, %c0_27] : memref<1x12x20x4xf32, #tpu.memory_space<vmem>>, vector<1x12x16x4xf32>
    %36 = vector.shape_cast %35 : vector<1x12x16x4xf32> to vector<12x16x4xf32>
    %37 = vector.shape_cast %36 : vector<12x16x4xf32> to vector<192x4xf32>
    %c2_28 = arith.constant 2 : index
    %c0_29 = arith.constant 0 : index
    %c0_30 = arith.constant 0 : index
    %38 = vector.load %arg5[%c2_28, %c0_29, %c0_30] : memref<9x4x128xf32, #tpu.memory_space<vmem>>, vector<1x4x128xf32>
    %39 = vector.shape_cast %38 : vector<1x4x128xf32> to vector<4x128xf32>
    %40 = vector.extract_strided_slice %37 {offsets = [0, 0], sizes = [128, 4], strides = [1, 1]} : vector<192x4xf32> to vector<128x4xf32>
    %cst_31 = arith.constant dense<0.000000e+00> : vector<128x128xf32>
    %41 = tpu.matmul %40, %39, %cst_31 {dimension_numbers = #tpu.dot_dimension_numbers<[1], [0], [0], [1], [0, 0, 1, 1], [], []>} : vector<128x4xf32>, vector<4x128xf32>, vector<128x128xf32> -> vector<128x128xf32>
    %42 = arith.addf %34, %41 : vector<128x128xf32>
    %c5 = arith.constant 5 : index
    %c0_32 = arith.constant 0 : index
    %c0_33 = arith.constant 0 : index
    %43 = vector.load %arg5[%c5, %c0_32, %c0_33] : memref<9x4x128xf32, #tpu.memory_space<vmem>>, vector<1x4x128xf32>
    %44 = vector.shape_cast %43 : vector<1x4x128xf32> to vector<4x128xf32>
    %45 = vector.extract_strided_slice %37 {offsets = [32, 0], sizes = [128, 4], strides = [1, 1]} : vector<192x4xf32> to vector<128x4xf32>
    %cst_34 = arith.constant dense<0.000000e+00> : vector<128x128xf32>
    %46 = tpu.matmul %45, %44, %cst_34 {dimension_numbers = #tpu.dot_dimension_numbers<[1], [0], [0], [1], [0, 0, 1, 1], [], []>} : vector<128x4xf32>, vector<4x128xf32>, vector<128x128xf32> -> vector<128x128xf32>
    %47 = arith.addf %42, %46 : vector<128x128xf32>
    %c8 = arith.constant 8 : index
    %c0_35 = arith.constant 0 : index
    %c0_36 = arith.constant 0 : index
    %48 = vector.load %arg5[%c8, %c0_35, %c0_36] : memref<9x4x128xf32, #tpu.memory_space<vmem>>, vector<1x4x128xf32>
    %49 = vector.shape_cast %48 : vector<1x4x128xf32> to vector<4x128xf32>
    %50 = vector.extract_strided_slice %37 {offsets = [64, 0], sizes = [128, 4], strides = [1, 1]} : vector<192x4xf32> to vector<128x4xf32>
    %cst_37 = arith.constant dense<0.000000e+00> : vector<128x128xf32>
    %51 = tpu.matmul %50, %49, %cst_37 {dimension_numbers = #tpu.dot_dimension_numbers<[1], [0], [0], [1], [0, 0, 1, 1], [], []>} : vector<128x4xf32>, vector<4x128xf32>, vector<128x128xf32> -> vector<128x128xf32>
    %52 = arith.addf %47, %51 : vector<128x128xf32>
    %c0_38 = arith.constant 0 : index
    %c0_39 = arith.constant 0 : index
    %53 = vector.load %arg6[%c0_38, %c0_39] : memref<1x128xf32, #tpu.memory_space<vmem>>, vector<1x128xf32>
    %54 = vector.shape_cast %53 : vector<1x128xf32> to vector<128xf32>
    %55 = vector.shape_cast %54 : vector<128xf32> to vector<1x128xf32>
    %56 = vector.broadcast %55 : vector<1x128xf32> to vector<128x128xf32>
    %57 = arith.mulf %52, %56 : vector<128x128xf32>
    %c0_40 = arith.constant 0 : index
    %c0_41 = arith.constant 0 : index
    %58 = vector.load %arg7[%c0_40, %c0_41] : memref<1x128xf32, #tpu.memory_space<vmem>>, vector<1x128xf32>
    %59 = vector.shape_cast %58 : vector<1x128xf32> to vector<128xf32>
    %60 = vector.shape_cast %59 : vector<128xf32> to vector<1x128xf32>
    %61 = vector.broadcast %60 : vector<1x128xf32> to vector<128x128xf32>
    %62 = arith.addf %57, %61 : vector<128x128xf32>
    %cst_42 = arith.constant 0.000000e+00 : f32
    %63 = vector.broadcast %cst_42 : f32 to vector<128x128xf32>
    %64 = arith.maximumf %62, %63 : vector<128x128xf32>
    %65 = vector.shape_cast %64 : vector<128x128xf32> to vector<8x16x128xf32>
    %c0_43 = arith.constant 0 : index
    %c0_44 = arith.constant 0 : index
    %c0_45 = arith.constant 0 : index
    %c0_46 = arith.constant 0 : index
    %66 = vector.load %arg8[%c0_43, %c0_44, %c0_45, %c0_46] : memref<1x8x16x128xf32, #tpu.memory_space<vmem>>, vector<1x8x16x128xf32>
    %67 = vector.shape_cast %66 : vector<1x8x16x128xf32> to vector<8x16x128xf32>
    %68 = vector.shape_cast %65 : vector<8x16x128xf32> to vector<1x8x16x128xf32>
    tpu.vector_store %arg8[%c0_43, %c0_44, %c0_45, %c0_46], %68 {strides = array<i32>} : memref<1x8x16x128xf32, #tpu.memory_space<vmem>>, vector<1x8x16x128xf32>,
    return
  }
  func.func @transform_0(%arg0: i32, %arg1: i32, %arg2: i32, %arg3: i32) -> (i32, i32, i32, i32) {
    %c2_i32 = arith.constant 2 : i32
    %0 = arith.muli %arg0, %c2_i32 : i32
    %1 = arith.addi %0, %arg1 : i32
    %c0_i32 = arith.constant 0 : i32
    %c0_i32_0 = arith.constant 0 : i32
    %c0_i32_1 = arith.constant 0 : i32
    return %1, %c0_i32, %c0_i32_0, %arg3 : i32, i32, i32, i32
  }
  func.func @transform_1(%arg0: i32, %arg1: i32, %arg2: i32, %arg3: i32) -> (i32, i32, i32) {
    %c0_i32 = arith.constant 0 : i32
    %c0_i32_0 = arith.constant 0 : i32
    %c0_i32_1 = arith.constant 0 : i32
    return %c0_i32, %c0_i32_0, %arg2 : i32, i32, i32
  }
  func.func @transform_2(%arg0: i32, %arg1: i32, %arg2: i32, %arg3: i32) -> (i32, i32) {
    %c0_i32 = arith.constant 0 : i32
    %c0_i32_0 = arith.constant 0 : i32
    return %c0_i32, %arg2 : i32, i32
  }
  func.func @transform_3(%arg0: i32, %arg1: i32, %arg2: i32, %arg3: i32) -> (i32, i32) {
    %c0_i32 = arith.constant 0 : i32
    %c0_i32_0 = arith.constant 0 : i32
    return %c0_i32, %arg2 : i32, i32
  }
  func.func @transform_4(%arg0: i32, %arg1: i32, %arg2: i32, %arg3: i32) -> (i32, i32, i32, i32) {
    %c0_i32 = arith.constant 0 : i32
    %c0_i32_0 = arith.constant 0 : i32
    return %arg0, %arg1, %c0_i32, %arg2 : i32, i32, i32, i32
  }
}

</mosaic_0001>

<bundles_post_ra>
// kernel: aspp_module_pallas.1
= control target key start
LH: loop header
LB: loop body
LE: loop exit
PB: predicated region body
PF: predicated region fallthrough
CT: control target
= control target key end

     0   :  { %s3099_s15 = smov 0   ;;  %s3101_s16 = smov 0   ;;  %s3682_s0 = inlined_call_operand.vmem [shape: f32[4,12,20,4], index: 0, kind: input, shape index: {}]   ;;  %s3683_s1 = inlined_call_operand.vmem [shape: f32[9,4,128], index: 1, kind: input, shape index: {}]   ;;  %s3684_s2 = inlined_call_operand.vmem [shape: f32[1,128], index: 2, kind: input, shape index: {}]   ;;  %s3685_s3 = inlined_call_operand.vmem [shape: f32[1,128], index: 3, kind: input, shape index: {}]   ;;  %s3686_s4 = inlined_call_operand.vmem [shape: f32[2,16,16,128], index: 4, kind: output, shape index: {}]  }
   0x1   :  { %s3103_s17 = smov 0   ;;  %s3105_s18 = smov 0  }
   0x2   :  { %s3107_s19 = smov 0  }
   0x3 LB: > { %s36_s20 = sadd.s32 1, %s3064_s17  ;;  %s40_s21 = sadd.s32 1, %s3068_s18  ;;  %s3072_s19 = sphi %s3107_s19, %s14_s19   ;;  %s3068_s18 = sphi %s3105_s18, %s3690_s18   ;;  %s3064_s17 = sphi %s3103_s17, %s3689_s17   ;;  %s3060_s16 = sphi %s3101_s16, %s3688_s16   ;;  %s3056_s15 = sphi %s3099_s15, %s3687_s15  }
   0x4   : > { %p38_p0 = scmp.ge.s32.totalorder %s36_s20, 2  ;;  %p2304_p1 = scmp.ge.s32.totalorder %s3072_s19, 1 }
   0x5   : > { %p230_p2 = scmp.lt.s32.totalorder %s3072_s19, 5 }
   0x6   : > { %s3692_s20 = smov (%p38_p0, %s36_s20), 0  ;;  %s3694_s21 = smov (!%p38_p0, %s40_s21), %s3068_s18 }
   0x7   : > { %p231_p3 = pnand %p2304_p1, %p230_p2  ;;  %p42_p4 = scmp.ge.s32.totalorder %s3694_s21, 2 }
   0x8   : > { %v2311_v0 = vld [vmem:[%s3683_s1 + $0xc] sm:$0xf] (!%p231_p3)  ;;  %vm391_vm0 = vcmask (!%p231_p3), 1043456   ;;  %v3139_v1 = vld [vmem:[%s3683_s1 + $0x10] sm:$0xf] (!%p231_p3)  ;;  %s2305_s26 = sshll.u32 (!%p231_p3), %s3060_s16, 1 }
   0x9   : > { %s3696_s21 = smov (%p42_p4, %s3694_s21), 0  ;;  %234 = sbr.rel (%p231_p3) target bundleno = 385 (0x181), region = 36 }
   0xa   : > { %2629 = vmatprep.subr.msk.mxu1 (!%p231_p3), %vm391_vm0, %v2311_v0  ;;  %2733 = vmatprep.subr.msk.mxu0 (!%p231_p3), %vm391_vm0, %v3139_v1  ;;  %s280_s27 = sadd.s32 (!%p231_p3), %s3056_s15, %s2305_s26  ;;  %v339_v2 = vld [vmem:[%s3683_s1] sm:$0xf] (!%p231_p3)  ;;  %v2400_v3 = vld [vmem:[%s3683_s1 + $0x1c] sm:$0xf] (!%p231_p3)  ;;  %vm342_vm1 = vcmask (!%p231_p3), 31744   ;;  %p302_p6 = scmp.lt.s32.totalorder (!%p231_p3), %s3060_s16, 1 }
   0xb   : > { %2630 = vmatpush3.msk.msra.mxu1 (!%p231_p3), %vm391_vm0, %v2311_v0  ;;  %2734 = vmatpush3.msk.msra.mxu0 (!%p231_p3), %vm391_vm0, %v3139_v1  ;;  %p281_p5 = scmp.lt.s32.totalorder (!%p231_p3), %s280_s27, 3  ;;  %v2418_v10 = vld [vmem:[%s3683_s1 + $0x8] sm:$0xf] (!%p231_p3)  ;;  %v3194_v11 = vld [vmem:[%s3683_s1 + $0x18] sm:$0xf] (!%p231_p3) }
   0xc   : > { %2655 = vmatprep.subr.msk.mxu1 (!%p231_p3), %vm391_vm0, %v339_v2  ;;  %2759 = vmatprep.subr.msk.mxu0 (!%p231_p3), %vm391_vm0, %v2400_v3  ;;  %v3271_v25 = vld [vmem:[%s3683_s1 + $0x14] sm:$0xf] (!%p231_p3)  ;;  %v2364_v41 = vld [vmem:[%s3683_s1 + $0x4] sm:$0xf] (!%p231_p3)  ;;  %v2454_v51 = vld [vmem:[%s3683_s1 + $0x20] sm:$0xf] (!%p231_p3) }
  0x10   : > { %s3698_s27 = smov (!%p281_p5, %s280_s27), 3  ;;  %s3700_s16 = smov (!%p302_p6, %s3060_s16), 1 }
  0x11   : > { %s2993_s6 = smul.u32 288, %s3698_s27  ;;  %s2307_s27 = sshll.u32 %s3056_s15, 3 }
  0x12   : > { %p304_p7 = scmp.lt.s32.totalorder %s2307_s27, 15  ;;  %s2309_s29 = sshll.u32 %s3700_s16, 5 }
  0x13   : > { %s3160_s9 = scalar_lea.vmem %s3682_s0, %s2993_s6 }
  0x14   : > { %v3163_v4 = vld [vmem:[%s3160_s9 + $0x30] sm:$0xff]  ;;  %v3169_v6 = vld [vmem:[%s3160_s9 + $0x38] sm:$0xff]  ;;  %v3179_v8 = vld [vmem:[%s3160_s9 + $0x48] sm:$0xff]  ;;  %s3702_s27 = smov (!%p304_p7, %s2307_s27), 15 }
  0x15   : > { %v3166_v5 = vld [vmem:[%s3160_s9 + $0x32] sm:$0xff]  ;;  %2631 = vmatprep.mubr.msk.f32.mxu1 %vm342_vm1, %v3163_v4  ;;  %v3176_v7 = vld [vmem:[%s3160_s9 + $0x3a] sm:$0xff]  ;;  %v3182_v9 = vld [vmem:[%s3160_s9 + $0x4a] sm:$0xff]  ;;  %s2308_s28 = sshll.u32 %s3702_s27, 1 }
  0x16   : > { %2735 = vmatprep.mubr.msk.f32.mxu0 %vm342_vm1, %v3166_v5  ;;  %2632 = vmatmul.mubr.msk.f32.vlgmr.msra.gmra.mrb[0].mxu1 %vm342_vm1, %v3169_v6  ;;  %v3199_v12 = vld [vmem:[%s3160_s9 + $0x50] sm:$0xff]  ;;  %v3209_v14 = vld [vmem:[%s3160_s9 + $0x60] sm:$0xff]  ;;  %v3226_v16 = vld [vmem:[%s3160_s9 + $0x68] sm:$0xff]  ;;  %s311_s30 = sadd.s32 %s2309_s29, %s2308_s28 }
  0x17   : > { %2736 = vmatmul.mubr.msk.f32.vlgmr.msra.gmra.mrb[0].mxu0 %vm342_vm1, %v3176_v7  ;;  %2656 = vmatpush3.msk.msra.mxu1 %vm391_vm0, %v339_v2  ;;  %v3202_v13 = vld [vmem:[%s3160_s9 + $0x52] sm:$0xff]  ;;  %v3212_v15 = vld [vmem:[%s3160_s9 + $0x62] sm:$0xff]  ;;  %v3229_v17 = vld [vmem:[%s3160_s9 + $0x6a] sm:$0xff]  ;;  %s2310_s8 = sshll.u32 %s311_s30, 3 }
  0x18   : > { %2760 = vmatpush3.msk.msra.mxu0 %vm391_vm0, %v2400_v3  ;;  %2634 = vmatprep.mubr.msk.f32.mxu1 %vm342_vm1, %v3179_v8  ;;  %v3232_v18 = vld [vmem:[%s3160_s9 + $0x78] sm:$0xff]  ;;  %v3246_v20 = vld [vmem:[%s3160_s9 + $0x80] sm:$0xff]  ;;  %v3252_v22 = vld [vmem:[%s3160_s9 + $0x90] sm:$0xff]  ;;  %s3620_s10 = scalar_lea.vmem %s3686_s4, %s2310_s8 }
  0x19   : > { %2738 = vmatprep.mubr.msk.f32.mxu0 %vm342_vm1, %v3182_v9  ;;  %2785 = vmatprep.subr.msk.mxu0 %vm391_vm0, %v2418_v10  ;;  %v3235_v19 = vld [vmem:[%s3160_s9 + $0x7a] sm:$0xff]  ;;  %v3249_v21 = vld [vmem:[%s3160_s9 + $0x82] sm:$0xff]  ;;  %v3281_v26 = vld [vmem:[%s3160_s9 + $0xb0] sm:$0xff] }
  0x1a   : > { %2681 = vmatprep.subr.msk.mxu1 %vm391_vm0, %v3194_v11  ;;  %2635 = vmatmul.mubr.msk.f32.gmra.mrb[2].mxu1 %vm342_vm1, %v3199_v12  ;;  %v3263_v23 = vld [vmem:[%s3160_s9 + $0x98] sm:$0xff]  ;;  %v3266_v24 = vld [vmem:[%s3160_s9 + $0xa8] sm:$0xff]  ;;  %v3286_v27 = vld [vmem:[%s3160_s9 + $0xc0] sm:$0xff] }
  0x1b   : > { %2739 = vmatmul.mubr.msk.f32.gmra.mrb[2].mxu0 %vm342_vm1, %v3202_v13  ;;  %2637 = vmatprep.mubr.msk.f32.mxu1 %vm342_vm1, %v3209_v14  ;;  %v3289_v28 = vld [vmem:[%s3160_s9 + $0x92] sm:$0xff]  ;;  %v3302_v29 = vld [vmem:[%s3160_s9 + $0xc8] sm:$0xff]  ;;  %v3305_v30 = vld [vmem:[%s3160_s9 + $0x9a] sm:$0xff] }
  0x1c   : > { %2741 = vmatprep.mubr.msk.f32.mxu0 %vm342_vm1, %v3212_v15  ;;  %v3308_v31 = vld [vmem:[%s3160_s9 + $0xd8] sm:$0xff]  ;;  %v3311_v32 = vld [vmem:[%s3160_s9 + $0xaa] sm:$0xff]  ;;  %v3322_v33 = vld [vmem:[%s3160_s9 + $0xe0] sm:$0xff] }
  0x1d   : > { %v3325_v34 = vld [vmem:[%s3160_s9 + $0xb2] sm:$0xff]  ;;  %v315_v35 = vld [vmem:[%s3160_s9] sm:$0xff]  ;;  %v316_v37 = vld [vmem:[%s3160_s9 + $0x8] sm:$0xff] }
  0x1e   : > { %2638 = vmatmul.mubr.msk.f32.gmra.mrb[4].mxu1 %vm342_vm1, %v3226_v16  ;;  %v3329_v36 = vld [vmem:[%s3160_s9 + $0xc2] sm:$0xff]  ;;  %v3340_v38 = vld [vmem:[%s3160_s9 + $0xca] sm:$0xff]  ;;  %v317_v39 = vld [vmem:[%s3160_s9 + $0x18] sm:$0xff] }
  0x1f   : > { %2742 = vmatmul.mubr.msk.f32.gmra.mrb[4].mxu0 %vm342_vm1, %v3229_v17  ;;  %2640 = vmatprep.mubr.msk.f32.mxu1 %vm342_vm1, %v3232_v18  ;;  %v3344_v40 = vld [vmem:[%s3160_s9 + $0xda] sm:$0xff]  ;;  %v3357_v43 = vld [vmem:[%s3160_s9 + $0xe2] sm:$0xff]  ;;  %v898_v44 = vld [vmem:[%s3160_s9 + $0xf2] sm:$0xff] }
  0x20   : > { %2744 = vmatprep.mubr.msk.f32.mxu0 %vm342_vm1, %v3235_v19  ;;  %v318_v42 = vld [vmem:[%s3160_s9 + $0x20] sm:$0xff]  ;;  %v900_v46 = vld [vmem:[%s3160_s9 + $0x10a] sm:$0xff]  ;;  %v901_v47 = vld [vmem:[%s3160_s9 + $0x112] sm:$0xff] }
  0x21   : > { %v899_v45 = vld [vmem:[%s3160_s9 + $0xfa] sm:$0xff]  ;;  %v1472_v48 = vld [vmem:[%s3160_s9 + $0x4] sm:$0xff]  ;;  %v1473_v49 = vld [vmem:[%s3160_s9 + $0xc] sm:$0xff] }
  0x22   : > { %2641 = vmatmul.mubr.msk.f32.gmra.mrb[6].mxu1 %vm342_vm1, %v3246_v20  ;;  %v1474_v50 = vld [vmem:[%s3160_s9 + $0x1c] sm:$0xff]  ;;  %v1475_v52 = vld [vmem:[%s3160_s9 + $0x24] sm:$0xff]  ;;  %v1476_v53 = vld [vmem:[%s3160_s9 + $0x34] sm:$0xff] }
  0x23   : > { %2745 = vmatmul.mubr.msk.f32.gmra.mrb[6].mxu0 %vm342_vm1, %v3249_v21  ;;  %2643 = vmatprep.mubr.msk.f32.mxu1 %vm342_vm1, %v3252_v22  ;;  %v1477_v54 = vld [vmem:[%s3160_s9 + $0x3c] sm:$0xff]  ;;  %v1478_v55 = vld [vmem:[%s3160_s9 + $0x4c] sm:$0xff]  ;;  %v1479_v56 = vld [vmem:[%s3160_s9 + $0x54] sm:$0xff] }
  0x24   : > { %2761 = vmatprep.mubr.msk.f32.mxu0 %vm342_vm1, %v3212_v15  ;;  %v3417_v57 = vld [vmem:[%s3160_s9 + $0x64] sm:$0xff]  ;;  %v3427_v58 = vld [vmem:[%s3160_s9 + $0x6c] sm:$0xff]  ;;  %v3430_v59 = vld [vmem:[%s3160_s9 + $0x7c] sm:$0xff] }
  0x25   : > { %v3440_v60 = vld [vmem:[%s3160_s9 + $0x84] sm:$0xff]  ;;  %v3445_v61 = vld [vmem:[%s3160_s9 + $0x94] sm:$0xff]  ;;  %v3458_v62 = vld [vmem:[%s3160_s9 + $0x9c] sm:$0xff] }
  0x26   : > { %2644 = vmatmul.mubr.msk.f32.gmra.mrb[8].mxu1 %vm342_vm1, %v3263_v23  ;;  %v3461_v63 = vld [vmem:[%s3160_s9 + $0xac] sm:$0xff]  ;;  %v3472_v0 = vld [vmem:[%s3160_s9 + $0xb4] sm:$0xff] }
  0x27   : > { %2762 = vmatmul.mubr.msk.f32.vlgmr.msra.gmra.mrb[0].mxu0 %vm342_vm1, %v3229_v17  ;;  %2646 = vmatprep.mubr.msk.f32.mxu1 %vm342_vm1, %v3266_v24  ;;  %v335_v2 = vld [vmem:[%s3160_s9 + $0xf0] sm:$0xff]  ;;  %v336_v3 = vld [vmem:[%s3160_s9 + $0xf8] sm:$0xff] }
  0x28   : > { %2786 = vmatpush3.msk.msra.mxu0 %vm391_vm0, %v2418_v10  ;;  %2764 = vmatprep.mubr.msk.f32.mxu0 %vm342_vm1, %v3235_v19  ;;  %v879_v10 = vld [vmem:[%s3160_s9 + $0xa] sm:$0xff] }
  0x29   : > { %2811 = vmatprep.subr.msk.mxu0 %vm391_vm0, %v3271_v25 }
  0x2a   : > { %2647 = vmatmul.mubr.msk.f32.gmra.mrb[10].mxu1 %vm342_vm1, %v3281_v26 }
  0x2b   : > { %2765 = vmatmul.mubr.msk.f32.gmra.mrb[2].mxu0 %vm342_vm1, %v3249_v21  ;;  %2649 = vmatprep.mubr.msk.f32.mxu1 %vm342_vm1, %v3286_v27 }
  0x2c   : > { %2767 = vmatprep.mubr.msk.f32.mxu0 %vm342_vm1, %v3289_v28 }
  0x2e   : > { %2650 = vmatmul.mubr.msk.f32.gmra.mrb[12].mxu1 %vm342_vm1, %v3302_v29 }
  0x2f   : > { %2768 = vmatmul.mubr.msk.f32.gmra.mrb[4].mxu0 %vm342_vm1, %v3305_v30  ;;  %2652 = vmatprep.mubr.msk.f32.mxu1 %vm342_vm1, %v3308_v31 }
  0x30   : > { %2770 = vmatprep.mubr.msk.f32.mxu0 %vm342_vm1, %v3311_v32 }
  0x32   : > { %2653 = vmatmul.mubr.msk.f32.gmra.mrb[14].mxu1 %vm342_vm1, %v3322_v33 }
  0x33   : > { %2771 = vmatmul.mubr.msk.f32.gmra.mrb[6].mxu0 %vm342_vm1, %v3325_v34  ;;  %2657 = vmatprep.mubr.msk.f32.mxu1 %vm342_vm1, %v315_v35 }
  0x34   : > { %2773 = vmatprep.mubr.msk.f32.mxu0 %vm342_vm1, %v3329_v36 }
  0x36   : > { %2658 = vmatmul.mubr.msk.f32.vlgmr.msra.gmra.mrb[0].mxu1 %vm342_vm1, %v316_v37 }
  0x37   : > { %2774 = vmatmul.mubr.msk.f32.gmra.mrb[8].mxu0 %vm342_vm1, %v3340_v38  ;;  %2682 = vmatpush3.msk.msra.mxu1 %vm391_vm0, %v3194_v11  ;;  %v880_v11 = vld [vmem:[%s3160_s9 + $0x1a] sm:$0xff] }
  0x38   : > { %2660 = vmatprep.mubr.msk.f32.mxu1 %vm342_vm1, %v317_v39  ;;  %2776 = vmatprep.mubr.msk.f32.mxu0 %vm342_vm1, %v3344_v40 }
  0x39   : > { %2707 = vmatprep.subr.msk.mxu1 %vm391_vm0, %v2364_v41 }
  0x3a   : > { %2661 = vmatmul.mubr.msk.f32.gmra.mrb[2].mxu1 %vm342_vm1, %v318_v42 }
  0x3b   : > { %2777 = vmatmul.mubr.msk.f32.gmra.mrb[10].mxu0 %vm342_vm1, %v3357_v43  ;;  %2663 = vmatprep.mubr.msk.f32.mxu1 %vm342_vm1, %v3163_v4  ;;  %v337_v4 = vld [vmem:[%s3160_s9 + $0x108] sm:$0xff] }
  0x3c   : > { %2779 = vmatprep.mubr.msk.f32.mxu0 %vm342_vm1, %v898_v44 }
  0x3e   : > { %2664 = vmatmul.mubr.msk.f32.gmra.mrb[4].mxu1 %vm342_vm1, %v3169_v6  ;;  %v338_v6 = vld [vmem:[%s3160_s9 + $0x110] sm:$0xff] }
  0x3f   : > { %2780 = vmatmul.mubr.msk.f32.gmra.mrb[12].mxu0 %vm342_vm1, %v899_v45  ;;  %2666 = vmatprep.mubr.msk.f32.mxu1 %vm342_vm1, %v3179_v8  ;;  %v878_v8 = vld [vmem:[%s3160_s9 + $0x2] sm:$0xff] }
  0x40   : > { %2782 = vmatprep.mubr.msk.f32.mxu0 %vm342_vm1, %v900_v46 }
  0x42   : > { %2667 = vmatmul.mubr.msk.f32.gmra.mrb[6].mxu1 %vm342_vm1, %v3199_v12  ;;  %v881_v12 = vld [vmem:[%s3160_s9 + $0x22] sm:$0xff] }
  0x43   : > { %2783 = vmatmul.mubr.msk.f32.gmra.mrb[14].mxu0 %vm342_vm1, %v901_v47  ;;  %2669 = vmatprep.mubr.msk.f32.mxu1 %vm342_vm1, %v3209_v14 }
  0x44   : > { %2787 = vmatprep.mubr.msk.f32.mxu0 %vm342_vm1, %v1472_v48 }
  0x46   : > { %2670 = vmatmul.mubr.msk.f32.gmra.mrb[8].mxu1 %vm342_vm1, %v3226_v16 }
  0x47   : > { %2788 = vmatmul.mubr.msk.f32.vlgmr.msra.gmra.mrb[0].mxu0 %vm342_vm1, %v1473_v49  ;;  %2672 = vmatprep.mubr.msk.f32.mxu1 %vm342_vm1, %v3232_v18 }
  0x48   : > { %2812 = vmatpush3.msk.msra.mxu0 %vm391_vm0, %v3271_v25  ;;  %2790 = vmatprep.mubr.msk.f32.mxu0 %vm342_vm1, %v1474_v50 }
  0x49   : > { %2837 = vmatprep.subr.msk.mxu0 %vm391_vm0, %v2454_v51 }
  0x4a   : > { %2673 = vmatmul.mubr.msk.f32.gmra.mrb[10].mxu1 %vm342_vm1, %v3246_v20 }
  0x4b   : > { %2791 = vmatmul.mubr.msk.f32.gmra.mrb[2].mxu0 %vm342_vm1, %v1475_v52  ;;  %2675 = vmatprep.mubr.msk.f32.mxu1 %vm342_vm1, %v3252_v22 }
  0x4c   : > { %2793 = vmatprep.mubr.msk.f32.mxu0 %vm342_vm1, %v1476_v53 }
  0x4e   : > { %2676 = vmatmul.mubr.msk.f32.gmra.mrb[12].mxu1 %vm342_vm1, %v3263_v23 }
  0x4f   : > { %2794 = vmatmul.mubr.msk.f32.gmra.mrb[4].mxu0 %vm342_vm1, %v1477_v54  ;;  %2678 = vmatprep.mubr.msk.f32.mxu1 %vm342_vm1, %v3266_v24 }
  0x50   : > { %2796 = vmatprep.mubr.msk.f32.mxu0 %vm342_vm1, %v1478_v55 }
  0x52   : > { %2679 = vmatmul.mubr.msk.f32.gmra.mrb[14].mxu1 %vm342_vm1, %v3281_v26 }
  0x53   : > { %2797 = vmatmul.mubr.msk.f32.gmra.mrb[6].mxu0 %vm342_vm1, %v1479_v56  ;;  %2683 = vmatprep.mubr.msk.f32.mxu1 %vm342_vm1, %v3209_v14  ;;  %v1488_v14 = vld [vmem:[%s3160_s9 + $0xc4] sm:$0xff] }
  0x54   : > { %2799 = vmatprep.mubr.msk.f32.mxu0 %vm342_vm1, %v3417_v57 }
  0x56   : > { %2684 = vmatmul.mubr.msk.f32.vlgmr.msra.gmra.mrb[0].mxu1 %vm342_vm1, %v3226_v16  ;;  %v1489_v16 = vld [vmem:[%s3160_s9 + $0xcc] sm:$0xff] }
  0x57   : > { %2800 = vmatmul.mubr.msk.f32.gmra.mrb[8].mxu0 %vm342_vm1, %v3427_v58  ;;  %2708 = vmatpush3.msk.msra.mxu1 %vm391_vm0, %v2364_v41 }
  0x58   : > { %2686 = vmatprep.mubr.msk.f32.mxu1 %vm342_vm1, %v3232_v18  ;;  %2802 = vmatprep.mubr.msk.f32.mxu0 %vm342_vm1, %v3430_v59  ;;  %v1490_v18 = vld [vmem:[%s3160_s9 + $0xdc] sm:$0xff] }
  0x59   : > { %2863 = vmatprep.subr.msk.mxu1 %vm391_vm0, %v3139_v1 }
  0x5a   : > { %2687 = vmatmul.mubr.msk.f32.gmra.mrb[2].mxu1 %vm342_vm1, %v3246_v20 }
  0x5b   : > { %2803 = vmatmul.mubr.msk.f32.gmra.mrb[10].mxu0 %vm342_vm1, %v3440_v60  ;;  %2689 = vmatprep.mubr.msk.f32.mxu1 %vm342_vm1, %v3252_v22 }
  0x5c   : > { %2805 = vmatprep.mubr.msk.f32.mxu0 %vm342_vm1, %v3445_v61 }
  0x5e   : > { %2690 = vmatmul.mubr.msk.f32.gmra.mrb[4].mxu1 %vm342_vm1, %v3263_v23 }
  0x5f   : > { %2806 = vmatmul.mubr.msk.f32.gmra.mrb[12].mxu0 %vm342_vm1, %v3458_v62  ;;  %2692 = vmatprep.mubr.msk.f32.mxu1 %vm342_vm1, %v3266_v24 }
  0x60   : > { %2808 = vmatprep.mubr.msk.f32.mxu0 %vm342_vm1, %v3461_v63 }
  0x62   : > { %2693 = vmatmul.mubr.msk.f32.gmra.mrb[6].mxu1 %vm342_vm1, %v3281_v26  ;;  %v3607_v26 = vld [vmem:[%s3684_s2] ss:$0 sm:$0xff] }
  0x63   : > { %2809 = vmatmul.mubr.msk.f32.gmra.mrb[14].mxu0 %vm342_vm1, %v3472_v0  ;;  %2695 = vmatprep.mubr.msk.f32.mxu1 %vm342_vm1, %v3286_v27 }
  0x64   : > { %2813 = vmatprep.mubr.msk.f32.mxu0 %vm342_vm1, %v1476_v53 }
  0x66   : > { %2696 = vmatmul.mubr.msk.f32.gmra.mrb[8].mxu1 %vm342_vm1, %v3302_v29  ;;  %v3612_v29 = vld [vmem:[%s3685_s3] ss:$0 sm:$0xff] }
  0x67   : > { %2814 = vmatmul.mubr.msk.f32.vlgmr.msra.gmra.mrb[0].mxu0 %vm342_vm1, %v1477_v54  ;;  %2698 = vmatprep.mubr.msk.f32.mxu1 %vm342_vm1, %v3308_v31 }
  0x68   : > { %2838 = vmatpush3.msk.msra.mxu0 %vm391_vm0, %v2454_v51  ;;  %2816 = vmatprep.mubr.msk.f32.mxu0 %vm342_vm1, %v1478_v55 }
  0x6a   : > { %2699 = vmatmul.mubr.msk.f32.gmra.mrb[10].mxu1 %vm342_vm1, %v3322_v33 }
  0x6b   : > { %2817 = vmatmul.mubr.msk.f32.gmra.mrb[2].mxu0 %vm342_vm1, %v1479_v56  ;;  %2701 = vmatprep.mubr.msk.f32.mxu1 %vm342_vm1, %v335_v2 }
  0x6c   : > { %2819 = vmatprep.mubr.msk.f32.mxu0 %vm342_vm1, %v3417_v57 }
  0x6e   : > { %2702 = vmatmul.mubr.msk.f32.gmra.mrb[12].mxu1 %vm342_vm1, %v336_v3 }
  0x6f   : > { %2820 = vmatmul.mubr.msk.f32.gmra.mrb[4].mxu0 %vm342_vm1, %v3427_v58  ;;  %2704 = vmatprep.mubr.msk.f32.mxu1 %vm342_vm1, %v337_v4 }
  0x70   : > { %2822 = vmatprep.mubr.msk.f32.mxu0 %vm342_vm1, %v3430_v59 }
  0x72   : > { %2705 = vmatmul.mubr.msk.f32.gmra.mrb[14].mxu1 %vm342_vm1, %v338_v6 }
  0x73   : > { %2823 = vmatmul.mubr.msk.f32.gmra.mrb[6].mxu0 %vm342_vm1, %v3440_v60  ;;  %2709 = vmatprep.mubr.msk.f32.mxu1 %vm342_vm1, %v878_v8 }
  0x74   : > { %2825 = vmatprep.mubr.msk.f32.mxu0 %vm342_vm1, %v3445_v61 }
  0x76   : > { %2710 = vmatmul.mubr.msk.f32.vlgmr.msra.gmra.mrb[0].mxu1 %vm342_vm1, %v879_v10 }
  0x77   : > { %2826 = vmatmul.mubr.msk.f32.gmra.mrb[8].mxu0 %vm342_vm1, %v3458_v62  ;;  %2864 = vmatpush3.msk.msra.mxu1 %vm391_vm0, %v3139_v1  ;;  %v1491_v1 = vld [vmem:[%s3160_s9 + $0xe4] sm:$0xff] }
  0x78   : > { %2712 = vmatprep.mubr.msk.f32.mxu1 %vm342_vm1, %v880_v11  ;;  %2828 = vmatprep.mubr.msk.f32.mxu0 %vm342_vm1, %v3461_v63 }
  0x7a   : > { %2713 = vmatmul.mubr.msk.f32.gmra.mrb[2].mxu1 %vm342_vm1, %v881_v12 }
  0x7b   : > { %2829 = vmatmul.mubr.msk.f32.gmra.mrb[10].mxu0 %vm342_vm1, %v3472_v0  ;;  %2715 = vmatprep.mubr.msk.f32.mxu1 %vm342_vm1, %v3166_v5  ;;  %v1492_v5 = vld [vmem:[%s3160_s9 + $0xf4] sm:$0xff] }
  0x7c   : > { %2831 = vmatprep.mubr.msk.f32.mxu0 %vm342_vm1, %v1488_v14 }
  0x7e   : > { %2716 = vmatmul.mubr.msk.f32.gmra.mrb[4].mxu1 %vm342_vm1, %v3176_v7  ;;  %v1493_v7 = vld [vmem:[%s3160_s9 + $0xfc] sm:$0xff] }
  0x7f   : > { %2832 = vmatmul.mubr.msk.f32.gmra.mrb[12].mxu0 %vm342_vm1, %v1489_v16  ;;  %2718 = vmatprep.mubr.msk.f32.mxu1 %vm342_vm1, %v3182_v9  ;;  %v1494_v9 = vld [vmem:[%s3160_s9 + $0x10c] sm:$0xff] }
  0x80   : > { %2834 = vmatprep.mubr.msk.f32.mxu0 %vm342_vm1, %v1490_v18 }
  0x82   : > { %2719 = vmatmul.mubr.msk.f32.gmra.mrb[6].mxu1 %vm342_vm1, %v3202_v13  ;;  %v1495_v13 = vld [vmem:[%s3160_s9 + $0x114] sm:$0xff] }
  0x83   : > { %2835 = vmatmul.mubr.msk.f32.gmra.mrb[14].mxu0 %vm342_vm1, %v1491_v1  ;;  %2721 = vmatprep.mubr.msk.f32.mxu1 %vm342_vm1, %v3212_v15 }
  0x84   : > { %2839 = vmatprep.mubr.msk.f32.mxu0 %vm342_vm1, %v3417_v57 }
  0x86   : > { %2722 = vmatmul.mubr.msk.f32.gmra.mrb[8].mxu1 %vm342_vm1, %v3229_v17 }
  0x87   : > { %2840 = vmatmul.mubr.msk.f32.vlgmr.msra.gmra.mrb[0].mxu0 %vm342_vm1, %v3427_v58  ;;  %2724 = vmatprep.mubr.msk.f32.mxu1 %vm342_vm1, %v3235_v19 }
  0x88   : > { %2842 = vmatprep.mubr.msk.f32.mxu0 %vm342_vm1, %v3430_v59 }
  0x8a   : > { %2725 = vmatmul.mubr.msk.f32.gmra.mrb[10].mxu1 %vm342_vm1, %v3249_v21 }
  0x8b   : > { %2843 = vmatmul.mubr.msk.f32.gmra.mrb[2].mxu0 %vm342_vm1, %v3440_v60  ;;  %2727 = vmatprep.mubr.msk.f32.mxu1 %vm342_vm1, %v3289_v28 }
  0x8c   : > { %2845 = vmatprep.mubr.msk.f32.mxu0 %vm342_vm1, %v3445_v61 }
  0x8e   : > { %2728 = vmatmul.mubr.msk.f32.gmra.mrb[12].mxu1 %vm342_vm1, %v3305_v30 }
  0x8f   : > { %2846 = vmatmul.mubr.msk.f32.gmra.mrb[4].mxu0 %vm342_vm1, %v3458_v62  ;;  %2730 = vmatprep.mubr.msk.f32.mxu1 %vm342_vm1, %v3311_v32 }
  0x90   : > { %2848 = vmatprep.mubr.msk.f32.mxu0 %vm342_vm1, %v3461_v63 }
  0x92   : > { %2731 = vmatmul.mubr.msk.f32.gmra.mrb[14].mxu1 %vm342_vm1, %v3325_v34 }
  0x93   : > { %2849 = vmatmul.mubr.msk.f32.gmra.mrb[6].mxu0 %vm342_vm1, %v3472_v0  ;;  %2747 = vmatprep.mubr.msk.f32.mxu1 %vm342_vm1, %v3289_v28 }
  0x94   : > { %2851 = vmatprep.mubr.msk.f32.mxu0 %vm342_vm1, %v1488_v14 }
  0x96   : > { %2748 = vmatmul.mubr.msk.f32.vlgmr.msra.gmra.mrb[8].mxu1 %vm342_vm1, %v3305_v30 }
  0x97   : > { %2852 = vmatmul.mubr.msk.f32.gmra.mrb[8].mxu0 %vm342_vm1, %v1489_v16  ;;  %2750 = vmatprep.mubr.msk.f32.mxu1 %vm342_vm1, %v3311_v32 }
  0x98   : > { %2854 = vmatprep.mubr.msk.f32.mxu0 %vm342_vm1, %v1490_v18 }
  0x9a   : > { %2751 = vmatmul.mubr.msk.f32.gmra.mrb[10].mxu1 %vm342_vm1, %v3325_v34 }
  0x9b   : > { %2855 = vmatmul.mubr.msk.f32.gmra.mrb[10].mxu0 %vm342_vm1, %v1491_v1  ;;  %2753 = vmatprep.mubr.msk.f32.mxu1 %vm342_vm1, %v3329_v36 }
  0x9c   : > { %2857 = vmatprep.mubr.msk.f32.mxu0 %vm342_vm1, %v1492_v5 }
  0x9e   : > { %2754 = vmatmul.mubr.msk.f32.gmra.mrb[12].mxu1 %vm342_vm1, %v3340_v38 }
  0x9f   : > { %2858 = vmatmul.mubr.msk.f32.gmra.mrb[12].mxu0 %vm342_vm1, %v1493_v7  ;;  %2756 = vmatprep.mubr.msk.f32.mxu1 %vm342_vm1, %v3344_v40 }
  0xa0   : > { %2860 = vmatprep.mubr.msk.f32.mxu0 %vm342_vm1, %v1494_v9 }
  0xa2   : > { %2757 = vmatmul.mubr.msk.f32.gmra.mrb[14].mxu1 %vm342_vm1, %v3357_v43 }
  0xa3   : > { %2861 = vmatmul.mubr.msk.f32.gmra.mrb[14].mxu0 %vm342_vm1, %v1495_v13 }
 0x149   : > { %v2711_v15 = vpop.f32.mrb[0].mxu1 }
 0x14a   : > { %v1021_v17 = vpop.f32.mrb[1].mxu1 }
 0x14d   : > { %v2714_v19 = vpop.f32.mrb[2].mxu1 }
 0x14e   : > { %v1031_v20 = vpop.f32.mrb[3].mxu1 }
 0x151   : > { %v2717_v21 = vpop.f32.mrb[4].mxu1 }
 0x152   : > { %v1041_v22 = vpop.f32.mrb[5].mxu1 }
 0x155   : > { %v2720_v23 = vpop.f32.mrb[6].mxu1 }
 0x156   : > { %v1051_v24 = vpop.f32.mrb[7].mxu1 }
 0x15a   : > { %v2841_v25 = vpop.f32.mrb[0].mxu0 }
 0x15b   : > { %v2865_v27 = vadd.f32 %v2841_v25, %v2711_v15  ;;  %v1971_v28 = vpop.f32.mrb[1].mxu0 }
 0x15c   : > { %v2866_v30 = vadd.f32 %v1971_v28, %v1021_v17 }
 0x15d   : > { %v2074_v31 = vmul.f32 %v2865_v27, %v3607_v26 }
 0x15e   : > { %v2073_v32 = vmul.f32 %v2866_v30, %v3607_v26  ;;  %v2844_v33 = vpop.f32.mrb[2].mxu0 }
 0x15f   : > { %v2097_v34 = vadd.f32 %v3612_v29, %v2074_v31  ;;  %v2867_v35 = vadd.f32 %v2844_v33, %v2714_v19  ;;  %v1981_v36 = vpop.f32.mrb[3].mxu0 }
 0x160   : > { %v2096_v37 = vadd.f32 %v3612_v29, %v2073_v32  ;;  %v2868_v38 = vadd.f32 %v1981_v36, %v1031_v20 }
 0x161   : > { %v2113_v39 = vmax.f32 %v2097_v34, 0.0  ;;  %v2076_v40 = vmul.f32 %v2867_v35, %v3607_v26 }
 0x162   : > { %v2112_v41 = vmax.f32 %v2096_v37, 0.0  ;;  %v2075_v42 = vmul.f32 %v2868_v38, %v3607_v26  ;;  %v2847_v43 = vpop.f32.mrb[4].mxu0 }
 0x163   : > { %2129 = vst [vmem:[%s3620_s10 + $0x8] sm:$0xff] %v2113_v39  ;;  %v2099_v44 = vadd.f32 %v3612_v29, %v2076_v40  ;;  %v2869_v45 = vadd.f32 %v2847_v43, %v2717_v21  ;;  %v1991_v46 = vpop.f32.mrb[5].mxu0 }
 0x164   : > { %2128 = vst [vmem:[%s3620_s10] sm:$0xff] %v2112_v41  ;;  %v2098_v47 = vadd.f32 %v3612_v29, %v2075_v42  ;;  %v2870_v48 = vadd.f32 %v1991_v46, %v1041_v22 }
 0x165   : > { %v2115_v49 = vmax.f32 %v2099_v44, 0.0  ;;  %v2078_v50 = vmul.f32 %v2869_v45, %v3607_v26 }
 0x166   : > { %v2114_v51 = vmax.f32 %v2098_v47, 0.0  ;;  %v2077_v52 = vmul.f32 %v2870_v48, %v3607_v26  ;;  %v2850_v53 = vpop.f32.mrb[6].mxu0 }
 0x167   : > { %2131 = vst [vmem:[%s3620_s10 + $0x18] sm:$0xff] %v2115_v49  ;;  %v2101_v54 = vadd.f32 %v3612_v29, %v2078_v50  ;;  %v2871_v55 = vadd.f32 %v2850_v53, %v2720_v23  ;;  %v2001_v56 = vpop.f32.mrb[7].mxu0 }
 0x168   : > { %2130 = vst [vmem:[%s3620_s10 + $0x10] sm:$0xff] %v2114_v51  ;;  %v2100_v57 = vadd.f32 %v3612_v29, %v2077_v52  ;;  %v2872_v58 = vadd.f32 %v2001_v56, %v1051_v24 }
 0x169   : > { %v2117_v59 = vmax.f32 %v2101_v54, 0.0  ;;  %v2080_v60 = vmul.f32 %v2871_v55, %v3607_v26  ;;  %v2749_v63 = vpop.f32.mrb[8].mxu1 }
 0x16a   : > { %v2116_v61 = vmax.f32 %v2100_v57, 0.0  ;;  %v2079_v62 = vmul.f32 %v2872_v58, %v3607_v26  ;;  %v2853_v0 = vpop.f32.mrb[8].mxu0  ;;  %v1239_v4 = vpop.f32.mrb[9].mxu1 }
 0x16b   : > { %2133 = vst [vmem:[%s3620_s10 + $0x28] sm:$0xff] %v2117_v59  ;;  %v2103_v2 = vadd.f32 %v3612_v29, %v2080_v60  ;;  %v2873_v3 = vadd.f32 %v2853_v0, %v2749_v63  ;;  %v2011_v6 = vpop.f32.mrb[9].mxu0 }
 0x16c   : > { %2132 = vst [vmem:[%s3620_s10 + $0x20] sm:$0xff] %v2116_v61  ;;  %v2102_v8 = vadd.f32 %v3612_v29, %v2079_v62  ;;  %v2874_v10 = vadd.f32 %v2011_v6, %v1239_v4 }
 0x16d   : > { %v2119_v11 = vmax.f32 %v2103_v2, 0.0  ;;  %v2082_v12 = vmul.f32 %v2873_v3, %v3607_v26  ;;  %v2752_v18 = vpop.f32.mrb[10].mxu1 }
 0x16e   : > { %v2118_v14 = vmax.f32 %v2102_v8, 0.0  ;;  %v2081_v16 = vmul.f32 %v2874_v10, %v3607_v26  ;;  %v2856_v1 = vpop.f32.mrb[10].mxu0  ;;  %v1249_v9 = vpop.f32.mrb[11].mxu1 }
 0x16f   : > { %2135 = vst [vmem:[%s3620_s10 + $0x38] sm:$0xff] %v2119_v11  ;;  %v2105_v5 = vadd.f32 %v3612_v29, %v2082_v12  ;;  %v2875_v7 = vadd.f32 %v2856_v1, %v2752_v18  ;;  %v2021_v13 = vpop.f32.mrb[11].mxu0 }
 0x170   : > { %2134 = vst [vmem:[%s3620_s10 + $0x30] sm:$0xff] %v2118_v14  ;;  %v2104_v15 = vadd.f32 %v3612_v29, %v2081_v16  ;;  %v2876_v17 = vadd.f32 %v2021_v13, %v1249_v9 }
 0x171   : > { %v2121_v19 = vmax.f32 %v2105_v5, 0.0  ;;  %v2084_v20 = vmul.f32 %v2875_v7, %v3607_v26  ;;  %v2755_v23 = vpop.f32.mrb[12].mxu1 }
 0x172   : > { %v2120_v21 = vmax.f32 %v2104_v15, 0.0  ;;  %v2083_v22 = vmul.f32 %v2876_v17, %v3607_v26  ;;  %v2859_v24 = vpop.f32.mrb[12].mxu0  ;;  %v1259_v28 = vpop.f32.mrb[13].mxu1 }
 0x173   : > { %2137 = vst [vmem:[%s3620_s10 + $0x48] sm:$0xff] %v2121_v19  ;;  %v2107_v25 = vadd.f32 %v3612_v29, %v2084_v20  ;;  %v2877_v27 = vadd.f32 %v2859_v24, %v2755_v23  ;;  %v2031_v30 = vpop.f32.mrb[13].mxu0 }
 0x174   : > { %2136 = vst [vmem:[%s3620_s10 + $0x40] sm:$0xff] %v2120_v21  ;;  %v2106_v31 = vadd.f32 %v3612_v29, %v2083_v22  ;;  %v2878_v32 = vadd.f32 %v2031_v30, %v1259_v28 }
 0x175   : > { %v2123_v33 = vmax.f32 %v2107_v25, 0.0  ;;  %v2086_v34 = vmul.f32 %v2877_v27, %v3607_v26  ;;  %v2758_v37 = vpop.f32.mrb[14].mxu1 }
 0x176   : > { %v2122_v35 = vmax.f32 %v2106_v31, 0.0  ;;  %v2085_v36 = vmul.f32 %v2878_v32, %v3607_v26  ;;  %v2862_v38 = vpop.f32.mrb[14].mxu0  ;;  %v1269_v41 = vpop.f32.mrb[15].mxu1 }
 0x177   : > { %2139 = vst [vmem:[%s3620_s10 + $0x58] sm:$0xff] %v2123_v33  ;;  %v2109_v39 = vadd.f32 %v3612_v29, %v2086_v34  ;;  %v2879_v40 = vadd.f32 %v2862_v38, %v2758_v37  ;;  %v2041_v42 = vpop.f32.mrb[15].mxu0 }
 0x178   : > { %2138 = vst [vmem:[%s3620_s10 + $0x50] sm:$0xff] %v2122_v35  ;;  %v2108_v43 = vadd.f32 %v3612_v29, %v2085_v36  ;;  %v2880_v44 = vadd.f32 %v2041_v42, %v1269_v41 }
 0x179   : > { %v2125_v45 = vmax.f32 %v2109_v39, 0.0  ;;  %v2088_v46 = vmul.f32 %v2879_v40, %v3607_v26 }
 0x17a   : > { %v2124_v47 = vmax.f32 %v2108_v43, 0.0  ;;  %v2087_v48 = vmul.f32 %v2880_v44, %v3607_v26 }
 0x17b   : > { %2141 = vst [vmem:[%s3620_s10 + $0x68] sm:$0xff] %v2125_v45  ;;  %v2111_v49 = vadd.f32 %v3612_v29, %v2088_v46 }
 0x17c   : > { %2140 = vst [vmem:[%s3620_s10 + $0x60] sm:$0xff] %v2124_v47  ;;  %v2110_v50 = vadd.f32 %v3612_v29, %v2087_v48 }
 0x17d   : > { %v2127_v51 = vmax.f32 %v2111_v49, 0.0 }
 0x17e   : > { %v2126_v52 = vmax.f32 %v2110_v50, 0.0 }
 0x17f   : > { %2143 = vst [vmem:[%s3620_s10 + $0x78] sm:$0xff] %v2127_v51 }
 0x180   : > { %2142 = vst [vmem:[%s3620_s10 + $0x70] sm:$0xff] %v2126_v52 }
 0x181 PF: > { %s14_s19 = sadd.s32 1, %s3072_s19   ;;  %s3687_s15 = smov %s3064_s17 }
 0x182   : > { %p11_p8 = scmp.ge.s32.totalorder %s14_s19, 6   ;;  %s3688_s16 = smov %s3068_s18 }
 0x183   : > { %s3689_s17 = smov %s3692_s20  ;;  %s3690_s18 = smov %s3696_s21 }
 0x184   :  { %13 = sbr.rel (!%p11_p8) target bundleno = 3 (0x3), region = 83 }

</bundles_post_ra>
